<compile_context>
chip_gen: v7x
topology: tpu7x:2x2x1
jax: 0.10.0
libtpu: 0.0.40
codegen_flags: <defaults>
</compile_context>

<pallas_src>
import functools

import jax
import jax.numpy as jnp
from jax.experimental import pallas as pl
from jax.experimental.pallas import tpu as pltpu


def _layernorm_kernel(x_ref, g_ref, b_ref, o_ref, *, eps):
    # x_ref block: (NB, R, L) -- NB whole samples resident in VMEM.
    # g_ref / b_ref: (R, 1) per-row (per-channel, pre-expanded) affine params.
    x = x_ref[...].astype(jnp.float32)
    _, r, l = x.shape
    n = r * l  # elements per sample (static)

    # Single pass over the tile: sum and sum-of-squares, then the unbiased
    # variance (ddof=1, as torch.Tensor.std() uses by default).
    s = jnp.sum(x, axis=(1, 2), keepdims=True)        # (NB, 1, 1)
    ss = jnp.sum(x * x, axis=(1, 2), keepdims=True)   # (NB, 1, 1)
    mean = s * (1.0 / n)
    var = jnp.maximum((ss - mean * s) / (n - 1), 0.0)  # = (ss - n*mean^2)/(n-1)
    std = jnp.sqrt(var)

    # y = (x - mean) / (std + eps) * gamma + beta
    #   = x * scale + (beta - mean * scale),  scale = gamma / (std + eps)
    # Reciprocal only touches NB scalars; the full tile sees a single FMA.
    inv = pl.reciprocal(std + eps, approx=False)       # (NB, 1, 1)
    g = g_ref[...].astype(jnp.float32)[None, :, :]     # (1, R, 1)
    b = b_ref[...].astype(jnp.float32)[None, :, :]     # (1, R, 1)
    scale = g * inv                                    # (NB, R, 1)
    shift = b - mean * scale                           # (NB, R, 1)
    o_ref[...] = (x * scale + shift).astype(o_ref.dtype)


def layer_norm_pallas(x_nchw, gamma, beta, eps=1e-05):
    """x_nchw: (N, C, H, W); gamma, beta: (C,). Returns (N, C, H, W)."""
    N, C, H, W = x_nchw.shape
    HW = H * W
    dtype = x_nchw.dtype
    itemsize = jnp.dtype(dtype).itemsize

    # Lane/sublane-dense layout: if HW divides into 128-lane rows, split each
    # channel into HW//128 rows so the (R, 128) tile fills vregs densely even
    # when C < 8. gamma/beta are expanded per-row so broadcasting is exact.
    if HW % 128 == 0:
        rpc = HW // 128                       # rows per channel
        R, L = C * rpc, 128
        g_rows = jnp.repeat(gamma.astype(jnp.float32), rpc).reshape(R, 1)
        b_rows = jnp.repeat(beta.astype(jnp.float32), rpc).reshape(R, 1)
    else:
        # Fallback: full (C, HW) sample block (no padding -> reductions stay exact).
        R, L = C, HW
        g_rows = gamma.astype(jnp.float32).reshape(R, 1)
        b_rows = beta.astype(jnp.float32).reshape(R, 1)

    x = x_nchw.reshape(N, R, L)

    # Pack samples per grid step so each block is ~1 MiB (per-step overhead is
    # ~0.35us), but keep >= 2 grid steps when possible so both v7x TensorCores
    # get work. Reductions inside the kernel stay per-sample (axes 1,2).
    sample_bytes = R * L * itemsize
    target_bytes = 1 << 20
    divisors = [d for d in range(1, N + 1) if N % d == 0]
    fitting = [d for d in divisors if d * sample_bytes <= target_bytes] or [1]
    pref = [d for d in fitting if N // d >= 2] or fitting
    NB = max(pref)
    grid = (N // NB,)

    # Explicit scoped-VMEM budget: double-buffered in+out blocks + f32
    # intermediates + affine rows, with headroom; capped for v7x (64 MiB).
    block_elems = NB * R * L
    need = 2 * 2 * block_elems * itemsize + 2 * block_elems * 4 + 8 * R * 4
    vmem_limit = int(min(64 << 20, max(need + (2 << 20), 16 << 20)))

    kernel = functools.partial(_layernorm_kernel, eps=float(eps))

    out = pl.pallas_call(
        kernel,
        out_shape=jax.ShapeDtypeStruct((N, R, L), dtype),
        grid_spec=pltpu.PrefetchScalarGridSpec(
            num_scalar_prefetch=0,
            grid=grid,
            in_specs=[
                pl.BlockSpec((NB, R, L), lambda i: (i, 0, 0)),
                pl.BlockSpec((R, 1), lambda i: (0, 0)),
                pl.BlockSpec((R, 1), lambda i: (0, 0)),
            ],
            out_specs=pl.BlockSpec((NB, R, L), lambda i: (i, 0, 0)),
        ),
        compiler_params=pltpu.CompilerParams(
            dimension_semantics=("parallel",),
            vmem_limit_bytes=vmem_limit,
        ),
    )(x, g_rows, b_rows)

    return out.reshape(N, C, H, W)


if __name__ == "__main__":
    key = jax.random.PRNGKey(0)
    kx, kg = jax.random.split(key)

    N, C, H, W = 2, 4, 16, 16
    x = jax.random.normal(kx, (N, C, H, W), dtype=jnp.float32)

    # Deterministic parameter init mirroring the module's __init__:
    # gamma ~ U[0,1), beta = zeros
    gamma = jax.random.uniform(kg, (C,), dtype=jnp.float32)
    beta = jnp.zeros((C,), dtype=jnp.float32)

    y = layer_norm_pallas(x, gamma, beta, eps=1e-05)
    jax.block_until_ready(y)

    # Pure-JAX reference with the module's exact semantics:
    # unbiased std over all non-batch dims, eps outside sqrt, per-channel affine.
    xf = x.reshape(N, -1)
    mean = xf.mean(axis=1).reshape(N, 1, 1, 1)
    std = jnp.std(xf, axis=1, ddof=1).reshape(N, 1, 1, 1)
    ref = (x - mean) / (std + 1e-05)
    ref = ref * gamma.reshape(1, C, 1, 1) + beta.reshape(1, C, 1, 1)
    assert jnp.allclose(y, ref, atol=1e-4, rtol=1e-4), float(
        jnp.max(jnp.abs(y - ref))
    )

    print("KERNEL_OK")
</pallas_src>

<mosaic_0001>
module attributes {stable_mosaic.version = 11 : i64} {
  func.func @_layernorm_kernel(%arg0: i32, %arg1: memref<1x8x128xf32, #tpu.memory_space<vmem>>, %arg2: memref<8x1xf32, #tpu.memory_space<vmem>>, %arg3: memref<8x1xf32, #tpu.memory_space<vmem>>, %arg4: memref<1x8x128xf32, #tpu.memory_space<vmem>>) attributes {dimension_semantics = [#tpu.dimension_semantics<parallel>], iteration_bounds = array<i64: 2>, scalar_prefetch = 0 : i64, scratch_operands = 0 : i64, tpu.core_type = #tpu.core_type<tc>, window_params = [{transform_indices = @transform_0, window_bounds = array<i64: 1, 8, 128>}, {pipeline_mode = #tpu.pipeline_mode<synchronous>, transform_indices = @transform_1, window_bounds = array<i64: 8, 1>}, {pipeline_mode = #tpu.pipeline_mode<synchronous>, transform_indices = @transform_2, window_bounds = array<i64: 8, 1>}, {transform_indices = @transform_3, window_bounds = array<i64: 1, 8, 128>}]} {
    %c0 = arith.constant 0 : index
    %c0_0 = arith.constant 0 : index
    %c0_1 = arith.constant 0 : index
    %0 = vector.load %arg1[%c0, %c0_0, %c0_1] : memref<1x8x128xf32, #tpu.memory_space<vmem>>, vector<1x8x128xf32>
    %cst = arith.constant dense<0.000000e+00> : vector<1xf32>
    %1 = vector.multi_reduction <add>, %0, %cst [1, 2] : vector<1x8x128xf32> to vector<1xf32>
    %2 = vector.shape_cast %1 : vector<1xf32> to vector<1x1x1xf32>
    %3 = arith.mulf %0, %0 : vector<1x8x128xf32>
    %cst_2 = arith.constant dense<0.000000e+00> : vector<1xf32>
    %4 = vector.multi_reduction <add>, %3, %cst_2 [1, 2] : vector<1x8x128xf32> to vector<1xf32>
    %5 = vector.shape_cast %4 : vector<1xf32> to vector<1x1x1xf32>
    %cst_3 = arith.constant 9.765625E-4 : f32
    %6 = vector.broadcast %cst_3 : f32 to vector<1x1x1xf32>
    %7 = arith.mulf %2, %6 : vector<1x1x1xf32>
    %8 = arith.mulf %7, %2 : vector<1x1x1xf32>
    %9 = arith.subf %5, %8 : vector<1x1x1xf32>
    %cst_4 = arith.constant 1.023000e+03 : f32
    %10 = vector.broadcast %cst_4 : f32 to vector<1x1x1xf32>
    %11 = arith.divf %9, %10 : vector<1x1x1xf32>
    %cst_5 = arith.constant 0.000000e+00 : f32
    %12 = vector.broadcast %cst_5 : f32 to vector<1x1x1xf32>
    %13 = arith.maximumf %11, %12 : vector<1x1x1xf32>
    %14 = math.sqrt %13 : vector<1x1x1xf32>
    %cst_6 = arith.constant 9.99999974E-6 : f32
    %15 = vector.broadcast %cst_6 : f32 to vector<1x1x1xf32>
    %16 = arith.addf %14, %15 : vector<1x1x1xf32>
    %17 = tpu.reciprocal %16 : vector<1x1x1xf32> -> vector<1x1x1xf32>
    %c0_7 = arith.constant 0 : index
    %c0_8 = arith.constant 0 : index
    %18 = vector.load %arg2[%c0_7, %c0_8] : memref<8x1xf32, #tpu.memory_space<vmem>>, vector<8x1xf32>
    %19 = vector.shape_cast %18 : vector<8x1xf32> to vector<1x8x1xf32>
    %c0_9 = arith.constant 0 : index
    %c0_10 = arith.constant 0 : index
    %20 = vector.load %arg3[%c0_9, %c0_10] : memref<8x1xf32, #tpu.memory_space<vmem>>, vector<8x1xf32>
    %21 = vector.shape_cast %20 : vector<8x1xf32> to vector<1x8x1xf32>
    %22 = vector.broadcast %17 : vector<1x1x1xf32> to vector<1x8x1xf32>
    %23 = arith.mulf %19, %22 : vector<1x8x1xf32>
    %24 = vector.broadcast %7 : vector<1x1x1xf32> to vector<1x8x1xf32>
    %25 = arith.mulf %24, %23 : vector<1x8x1xf32>
    %26 = arith.subf %21, %25 : vector<1x8x1xf32>
    %27 = vector.broadcast %23 : vector<1x8x1xf32> to vector<1x8x128xf32>
    %28 = arith.mulf %0, %27 : vector<1x8x128xf32>
    %29 = vector.broadcast %26 : vector<1x8x1xf32> to vector<1x8x128xf32>
    %30 = arith.addf %28, %29 : vector<1x8x128xf32>
    %c0_11 = arith.constant 0 : index
    %c0_12 = arith.constant 0 : index
    %c0_13 = arith.constant 0 : index
    %31 = vector.load %arg4[%c0_11, %c0_12, %c0_13] : memref<1x8x128xf32, #tpu.memory_space<vmem>>, vector<1x8x128xf32>
    tpu.vector_store %arg4[%c0_11, %c0_12, %c0_13], %30 {strides = array<i32>} : memref<1x8x128xf32, #tpu.memory_space<vmem>>, vector<1x8x128xf32>,
    return
  }
  func.func @transform_0(%arg0: i32) -> (i32, i32, i32) {
    %c0_i32 = arith.constant 0 : i32
    %c0_i32_0 = arith.constant 0 : i32
    %c0_i32_1 = arith.constant 0 : i32
    return %arg0, %c0_i32, %c0_i32_0 : i32, i32, i32
  }
  func.func @transform_1(%arg0: i32) -> (i32, i32) {
    %c0_i32 = arith.constant 0 : i32
    %c0_i32_0 = arith.constant 0 : i32
    %c0_i32_1 = arith.constant 0 : i32
    return %c0_i32, %c0_i32_0 : i32, i32
  }
  func.func @transform_2(%arg0: i32) -> (i32, i32) {
    %c0_i32 = arith.constant 0 : i32
    %c0_i32_0 = arith.constant 0 : i32
    %c0_i32_1 = arith.constant 0 : i32
    return %c0_i32, %c0_i32_0 : i32, i32
  }
  func.func @transform_3(%arg0: i32) -> (i32, i32, i32) {
    %c0_i32 = arith.constant 0 : i32
    %c0_i32_0 = arith.constant 0 : i32
    %c0_i32_1 = arith.constant 0 : i32
    return %arg0, %c0_i32, %c0_i32_0 : i32, i32, i32
  }
}

</mosaic_0001>

<bundles_post_ra>
// kernel: tpu_custom_call.1
= control target key start
LH: loop header
LB: loop body
LE: loop exit
PB: predicated region body
PF: predicated region fallthrough
CT: control target
= control target key end

     0   :  { %8 = vsyncpa [#allocation3], 0  ;;  %s538_s0 = inlined_call_operand.vmem [shape: f32[2,8,128], index: 0, kind: input, shape index: {}]   ;;  %s539_s1 = inlined_call_operand.vmem [shape: f32[8,1], index: 1, kind: input, shape index: {}]   ;;  %s540_s2 = inlined_call_operand.vmem [shape: f32[8,1], index: 2, kind: input, shape index: {}]   ;;  %s541_s3 = inlined_call_operand.hbm [shape: f32[2,8,128], index: 3, kind: output, shape index: {}]  }
   0x1   :  { %10 = vsyncpa [#allocation3 + $0x1], 0  ;;  %s432_s12 = smov 0   ;;  %s434_s13 = smov 0  }
   0x2   :  { %s436_s14 = smov 0   ;;  %s438_s15 = smov 0  }
   0x3 LB: > { %s453_s16 = sadd.s32 4294967295, %s408_s15   ;;  %s290_s17 = sadd.s32 4294967294, %s408_s15   ;;  %s408_s15 = sphi %s438_s15, %s547_s15   ;;  %s404_s14 = sphi %s436_s14, %s546_s14   ;;  %s400_s13 = sphi %s434_s13, %s545_s13   ;;  %s396_s12 = sphi %s432_s12, %s544_s12  }
   0x4   : > { %s457_s18 = sadd.s32 1, %s408_s15   ;;  %s91_s19 = sadd.s32 1, %s404_s14 }
   0x5   : > { %s88_s20 = ssub.s32 %s408_s15, %s457_s18  ;;  %p101_p0 = scmp.ne.s32.totalorder %s404_s14, %s400_s13 }
   0x6   : > { %p89_p1 = scmp.eq.s32.totalorder %s88_s20, 0  ;;  %p102_p2 = scmp.eq.s32.totalorder %s453_s16, 1 }
   0x7   : > { %p107_p3 = scmp.ne.s32.totalorder %s400_s13, %s396_s12  ;;  %p108_p4 = scmp.eq.s32.totalorder %s290_s17, 1 }
   0x8   : > { %s468_s21 = scalar_select %p89_p1, %s404_s14, %s91_s19  }
   0x9   : > { %p470_p5 = por %p102_p2, %p101_p0  ;;  %p474_p6 = por %p108_p4, %p107_p3 }
   0xa   : > { %p293_p7 = scmp.ge.s32.totalorder %s408_s15, 1  ;;  %p139_p8 = scmp.lt.s32.totalorder %s408_s15, 3 }
   0xc   : > { %p140_p9 = pnand %p293_p7, %p139_p8 }
   0xd   : > { %p162_p10 = scmp.lt.s32.totalorder (!%p140_p9), %s453_s16, 1  ;;  %v410_v2 = vmov (!%p140_p9), 0   ;;  %v199_v28 = vld [vmem:[%s539_s1] sm:$0xff] (!%p140_p9)  ;;  %s159_s6 = sand.u32 (!%p140_p9), 1, %s400_s13  }
   0xe   : > { %143 = sbr.rel (%p140_p9) target bundleno = 368 (0x170), region = 32  ;;  %340 = vset.pattern.permute.xlu1 (!%p140_p9), %v410_v2  ;;  %341 = vset.pattern.permute.xlu0 (!%p140_p9), %v410_v2  ;;  %v200_v31 = vld [vmem:[%s540_s2] sm:$0xff] (!%p140_p9)  ;;  %s294_s7 = sshll.u32 (!%p140_p9), %s159_s6, 3 }
   0xf   : > { %s297_s8 = sshll.u32 (!%p140_p9), %s453_s16, 7  ;;  %s161_s9 = scalar_lea.vmem (!%p140_p9), [#allocation2], %s294_s7 }
  0x10   : > { %s231_s10 = sshll.u32 (!%p140_p9), %s161_s9, 4  ;;  %s496_s19 = scalar_lea.hbm (!%p140_p9), %s541_s3, %s297_s8  ;;  %s498_s10 = int_to_ptr.vmem [resolvable:$true] %s231_s10 }
  0x11   : > { %s218_s20 = scalar_lea.sflag (!%p140_p9), [#allocation3], %s159_s6 }
  0x15   : > { %s163_s24 = scalar_select %p162_p10, %s453_s16, 1 }
  0x16   : > { %s411_s16 = smov [#allocation2]  }
  0x17   : > { %s295_s25 = sshll.u32 %s163_s24, 3  ;;  %s346_s24 = scalar_lea.vmem %s498_s10, 128 }
  0x18   : > { %s165_s28 = scalar_lea.vmem %s538_s0, %s295_s25  ;;  %p347_p11 = scmp.ne.s32.totalorder %s498_s10, %s346_s24 }
  0x19   : > { %v166_v0 = vld [vmem:[%s165_s28] sm:$0xff]  ;;  %s350_s25 = sshll.u32 %s411_s16, 4  ;;  %s351_s25 = int_to_ptr.vmem [resolvable:$false] %s350_s25 }
  0x1a   : > { %167 = vadd.xlane.f32.xlu0 %v166_v0  ;;  %v175_v1 = vmul.f32 %v166_v0, %v166_v0  ;;  %p348_p12 = pnand %p347_p11, %p470_p5  ;;  %s352_s26 = scalar_lea.vmem %s351_s25, 256 }
  0x1b   : > { %p353_p0 = scmp.lt.s32.totalorder %s498_s10, %s351_s25  ;;  %p354_p1 = scmp.lt.s32.totalorder %s352_s26, %s346_s24 }
  0x1c   : > { %p349_p13 = pneg %p348_p12 }
  0x1d   : > { %p355_p2 = por %p354_p1, %p353_p0 }
  0x1e   : > { %176 = vadd.xlane.f32.xlu0 %v175_v1 }
  0x1f   : > { %p356_p3 = pnand %p355_p2, %p349_p13 }
  0xa7   : > { %v168_v3 = vpop.xlane.xlu0 %167 }
  0xa8   : > { %v169_v4 = vrot.slane %v168_v3, 4 }
  0xaa   : > { %v170_v5 = vadd.f32 %v169_v4, %v168_v3 }
  0xab   : > { %v177_v6 = vpop.xlane.xlu0 %176 }
  0xac   : > { %v171_v7 = vrot.slane %v170_v5, 2  ;;  %v178_v8 = vrot.slane %v177_v6, 4 }
  0xae   : > { %v172_v9 = vadd.f32 %v171_v7, %v170_v5  ;;  %v179_v10 = vadd.f32 %v178_v8, %v177_v6 }
  0xb0   : > { %v173_v11 = vrot.slane %v172_v9, 1  ;;  %v180_v12 = vrot.slane %v179_v10, 2 }
  0xb2   : > { %v174_v13 = vadd.f32 %v173_v11, %v172_v9  ;;  %v181_v14 = vadd.f32 %v180_v12, %v179_v10 }
  0xb4   : > { %v182_v15 = vrot.slane %v181_v14, 1  ;;  %v184_v16 = vmul.f32 0.0009765625, %v174_v13 }
  0xb6   : > { %v183_v17 = vadd.f32 %v182_v15, %v181_v14  ;;  %v185_v18 = vmul.f32 %v184_v16, %v174_v13 }
  0xb8   : > { %v186_v19 = vsub.f32 %v183_v17, %v185_v18 }
  0xba   : > { %v188_v20 = vmul.f32 0.0009775171, %v186_v19 }
  0xbc   : > { %v189_v21 = vmax.f32 %v188_v20, 0.0 }
  0xbe   : > { %342 = vrsqrt.f32 %v189_v21  ;;  %vm192_vm0 = vcmp.eq.f32.partialorder %v189_v21, inf  ;;  %v195_v24 = vand.u32 2147483648, %v189_v21  ;;  %vm194_vm1 = vcmp.eq.f32.partialorder %v189_v21, 0.0 }
  0xc8   : > { %v343_v22 = vpop.eup %342 }
  0xc9   : > { %v191_v23 = vmul.f32 %v343_v22, %v189_v21 }
  0xcb   : > { %v193_v25 = vsel %vm192_vm0, %v189_v21, %v191_v23 }
  0xcc   : > { %v196_v26 = vsel %vm194_vm1, %v195_v24, %v193_v25 }
  0xcd   : > { %v197_v27 = vadd.f32 1e-05, %v196_v26 }
  0xcf   : > { %344 = vrcp.f32 %v197_v27 }
  0xd9   : > { %v345_v29 = vpop.eup %344 }
  0xda   : > { %v201_v30 = vmul.f32 %v345_v29, %v199_v28 }
  0xdc   : > { %206 = vperm.xlu1 %340, %v201_v30   ;;  %v202_v32 = vmul.f32 %v201_v30, %v184_v16 }
  0xde   : > { %v203_v33 = vsub.f32 %v200_v31, %v202_v32 }
  0xe0   : > { %212 = vperm.xlu1 %340, %v203_v33  }
 0x15b   : > { %v207_v34 = vpop.permute.xlu1 %206 }
 0x15c   : > { %v209_v35 = vmul.f32 %v207_v34, %v166_v0 }
 0x15f   : > { %v213_v36 = vpop.permute.xlu1 %212 }
 0x160   : > { %v215_v37 = vadd.f32 %v213_v36, %v209_v35 }
 0x162   : > { %216 = vst [vmem:[%s161_s9] sm:$0xff] %v215_v37 }
 0x163   : > { %359 = shalt.err (!%p356_p3)
}
 0x164   : > { %s360_s27 = scalar_lea.hbm %s496_s19, 128  ;;  %s364_s30 = scalar_lea.hbm %s541_s3, 256 }
 0x165   : > { %p361_p4 = scmp.ne.s32.totalorder %s496_s19, %s360_s27  ;;  %p365_p9 = scmp.lt.u32.totalorder %s496_s19, %s541_s3 }
 0x166   : > { %p366_p10 = scmp.lt.u32.totalorder %s364_s30, %s360_s27  ;;  %p368_p12 = scmp.lt.u32.totalorder %s360_s27, %s496_s19 }
 0x167   : > { %p362_p7 = pnand %p361_p4, %p470_p5 }
 0x168   : > { %p367_p11 = por %p366_p10, %p365_p9 }
 0x169   : > { %p363_p8 = pneg %p362_p7 }
 0x16a   : > { %p369_p13 = por %p368_p12, %p367_p11 }
 0x16c   : > { %p370_p0 = pnand %p369_p13, %p363_p8 }
 0x16e   : > { %373 = shalt.err (!%p370_p0)
}
 0x16f   : > { %300 = dma.vmem_to_hbm [thread:$0]  (%p470_p5), %s498_s10, 128, %s496_s19, %s218_s20  }
 0x170 PF: > { %p306_p1 = scmp.ge.s32.totalorder %s408_s15, 2  ;;  %s243_s6 = sand.u32 1, %s396_s12  }
 0x171   : > { %s244_s7 = scalar_lea.sflag [#allocation3], %s243_s6 }
 0x172   : > { %p303_p2 = pnand %p306_p1, %p474_p6 }
 0x174   : > { %391 = dma.done.wait (!%p303_p2), %s244_s7, 128  }
 0x175   : > { %393 = vsyncadd (!%p303_p2), %s244_s7, 4294967168  ;;  %p13_p3 = scmp.ge.s32.totalorder %s457_s18, 4   ;;  %s544_s12 = smov %s400_s13 }
 0x176   : > { %s545_s13 = smov %s404_s14  ;;  %s546_s14 = smov %s468_s21 }
 0x177   : > { %s547_s15 = smov %s457_s18  ;;  %15 = sbr.rel (!%p13_p3) target bundleno = 3 (0x3), region = 67 }
 0x17e   :  { %249 = vsyncpa [#allocation3], 1 }
 0x17f   :  { %251 = vsyncpa [#allocation3 + $0x1], 1 }

</bundles_post_ra>
